<compile_context>
chip_gen: v7x
topology: tpu7x:2x2x1
jax: 0.10.0
libtpu: 0.0.40
codegen_flags: <defaults>
</compile_context>

<pallas_src>
import functools
import math

import jax
import jax.numpy as jnp
import numpy as np
from jax import lax
from jax.experimental import pallas as pl
from jax.experimental.pallas import tpu as pltpu

LANE = 128
SUBLANE = 8


def _round_up(x, m):
    return (x + m - 1) // m * m


# ----------------------------- parameter init ----------------------------- #
def init_fcn2_params(key, input_channels, h, out_dim, num_layers, bias=False):
    """Deterministic synthetic params matching the PyTorch module's shapes."""
    d = 2 ** num_layers
    layer_cfgs = [(input_channels, h, d // 2)]
    for l in range(1, num_layers):
        layer_cfgs.append((h, h, d // 2 ** (l + 1)))

    keys = jax.random.split(key, 2 * num_layers + 1)
    weights, biases = [], ([] if bias else None)
    for i, (cin, cout, od) in enumerate(layer_cfgs):
        # nn.Parameter(torch.randn(out_channels*out_dim, input_channels*out_dim*2))
        w = jax.random.normal(keys[2 * i], (cout * od, cin * od * 2), jnp.float32)
        weights.append(w)
        if bias:
            biases.append(
                jax.random.normal(keys[2 * i + 1], (1, cout * od), jnp.float32)
            )
    beta = jax.random.normal(
        keys[-1], (h * d // 2 ** num_layers, out_dim), jnp.float32
    )
    in_chs = tuple(cfg[0] for cfg in layer_cfgs)
    return weights, biases, beta, in_chs


# ------------------------- one-time parameter prep ------------------------- #
def prepare_params(weights, biases, beta, in_chs, compute_dtype=jnp.bfloat16):
    """One-time prep (outside the per-call path):

    * fold 1/sqrt(in_ch) into W, transpose to (in, out) for lane-dense MXU matmuls,
    * zero-pad hidden widths to multiples of 128 lanes (weights, biases),
    * fold 0.1 into the bias (kept f32: it is added to the f32 accumulator),
    * fold 1/rows into beta, transpose to (out_dim, hidden) and pad to
      (round_up(out_dim, 8), padded_hidden) so the kernel's output store is a
      lane-dense (out_pad, TB) tile instead of a 128-lane-padded (TB, 128) one.
    """
    num_layers = len(weights)
    use_bias = biases is not None

    out_widths = [w.shape[0] for w in weights]
    pad_widths = [_round_up(o, LANE) for o in out_widths]

    w_t, b_prep = [], ([] if use_bias else None)
    for l, (w, c) in enumerate(zip(weights, in_chs)):
        wt = (w / math.sqrt(c)).T                      # (in_l, out_l), scale folded in
        in_l, out_l = wt.shape
        pin = in_l if l == 0 else pad_widths[l - 1]    # layer-0 K == flattened x width
        pout = pad_widths[l]
        wt_pad = jnp.zeros((pin, pout), jnp.float32).at[:in_l, :out_l].set(wt)
        w_t.append(wt_pad.astype(compute_dtype))
        if use_bias:
            b = biases[l] * 0.1                        # fold the 0.1 factor, keep f32
            b_prep.append(jnp.zeros((1, pout), jnp.float32).at[:, :out_l].set(b))

    hidden, out_dim = beta.shape
    out_pad = _round_up(out_dim, SUBLANE)
    beta_t = (beta.astype(jnp.float32) / hidden).T     # (out_dim, hidden), 1/rows folded
    beta_t_pad = (
        jnp.zeros((out_pad, pad_widths[-1]), jnp.float32)
        .at[:out_dim, :hidden]
        .set(beta_t)
        .astype(compute_dtype)
    )
    return w_t, b_prep, beta_t_pad, out_dim


# ------------------------------- Pallas kernel ----------------------------- #
def _make_fcn2_kernel(num_layers, use_bias):
    """Full hierarchical MLP + transposed readout for one batch tile, all in VMEM."""

    def kernel(*refs):
        # refs = (x, W0^T..W{L-1}^T, [b0..b{L-1}], beta_T, out)
        idx = 0
        x_ref = refs[idx]; idx += 1
        w_refs = refs[idx: idx + num_layers]; idx += num_layers
        b_refs = ()
        if use_bias:
            b_refs = refs[idx: idx + num_layers]; idx += num_layers
        beta_t_ref = refs[idx]; idx += 1
        out_ref = refs[idx]

        y = x_ref[...]                                  # (TB, in_dim) f32 from HBM
        for l in range(num_layers):
            w = w_refs[l][...]
            # scale already folded into w; MXU matmul with f32 accumulation.
            acc = jnp.dot(y.astype(w.dtype), w, preferred_element_type=jnp.float32)
            if use_bias:
                acc = acc + b_refs[l][...]              # 0.1 already folded in, f32 add
            y = jnp.maximum(acc, 0.0)                   # ReLU in f32 (safe on v5e)

        beta_t = beta_t_ref[...]                        # (out_pad8, hidden)
        # out^T = beta^T @ y^T : contract the hidden axis of both operands -> (out_pad8, TB)
        # Lane-dense store along the batch axis; zero-padded rows sliced off in the wrapper.
        out_t = lax.dot_general(
            beta_t, y.astype(beta_t.dtype),
            dimension_numbers=(((1,), (1,)), ((), ())),
            preferred_element_type=jnp.float32)
        out_ref[...] = out_t.astype(out_ref.dtype)

    return kernel


# --------------------------------- wrapper --------------------------------- #
def _fcn2_pallas_call(x, w_t, b_prep, beta_t_pad, *, block_b):
    B = x.shape[0]
    in_dim = int(np.prod(x.shape[1:]))
    # Contiguous collapse reshape only: NO dtype cast, NO pad pass over x here.
    x_flat = x.reshape(B, in_dim)

    num_layers = len(w_t)
    use_bias = b_prep is not None
    out_pad = beta_t_pad.shape[0]

    # Batch tiling: one full-extent tile when B fits in a block, otherwise 128-multiple
    # tiles (lane-dense output stores); the partial final tile is handled by Pallas.
    if B <= block_b:
        tb, n_tiles = B, 1
    else:
        tb = _round_up(min(block_b, B), LANE)
        n_tiles = pl.cdiv(B, tb)
        # v7x megacore: prefer an even tile count so both TensorCores stay busy.
        if n_tiles > 1 and n_tiles % 2 == 1:
            tb2 = _round_up(pl.cdiv(B, n_tiles + 1), LANE)
            if tb2 > 0 and pl.cdiv(B, tb2) % 2 == 0:
                tb = tb2
                n_tiles = pl.cdiv(B, tb)

    inputs = [x_flat] + list(w_t) + (list(b_prep) if use_bias else []) + [beta_t_pad]

    # x streams per batch tile; weights/biases/beta stay resident (constant block index).
    in_specs = [pl.BlockSpec((tb, in_dim), lambda i: (i, 0))]
    for a in inputs[1:]:
        in_specs.append(pl.BlockSpec(a.shape, lambda i, nd=a.ndim: (0,) * nd))
    out_specs = pl.BlockSpec((out_pad, tb), lambda i: (0, i))

    # VMEM budget guard: resident weights are duplicated per TensorCore on v7x (64 MiB
    # physical, 32 MiB scoped default); only raise the limit when actually needed.
    resident = sum(int(np.prod(a.shape)) * a.dtype.itemsize for a in inputs[1:])
    per_tile = 2 * tb * in_dim * x_flat.dtype.itemsize          # double-buffered x
    per_tile += 2 * out_pad * tb * 4                            # double-buffered out
    per_tile += 4 * tb * max(w.shape[1] for w in w_t) * 4       # f32 intermediates
    est_bytes = resident + per_tile
    compiler_kwargs = {}
    if est_bytes > 30 * 2 ** 20:
        # TODO(synk): for large h/d switch to a K-tiled weight pipeline instead of
        # fully-resident weights; for now just raise the scoped-VMEM limit (<= v7x 64 MiB).
        compiler_kwargs["vmem_limit_bytes"] = int(min(1.5 * est_bytes, 60 * 2 ** 20))

    kernel = _make_fcn2_kernel(num_layers, use_bias)
    return pl.pallas_call(
        kernel,
        out_shape=jax.ShapeDtypeStruct((out_pad, B), jnp.float32),
        grid=(n_tiles,),
        in_specs=in_specs,
        out_specs=out_specs,
        compiler_params=pltpu.CompilerParams(
            dimension_semantics=("parallel",),  # shard batch tiles across v7x's 2 TCs
            **compiler_kwargs,
        ),
    )(*inputs)


@functools.partial(jax.jit, static_argnames=("out_dim", "block_b"))
def fcn2_forward(x, w_t, b_prep, beta_t_pad, *, out_dim, block_b=2048):
    """Jitted forward; params are already prepared (no per-call transposes/casts)."""
    out_t = _fcn2_pallas_call(x, w_t, b_prep, beta_t_pad, block_b=block_b)
    # Tiny (out_dim, B) -> (B, out_dim) slice+transpose, fused inside the jit.
    return out_t[:out_dim, :].T


# ------------------------------ pure-JAX reference -------------------------- #
def fcn2_ref(x, weights, biases, beta, in_chs):
    y = x.reshape(x.shape[0], -1).astype(jnp.float32)
    for i, w in enumerate(weights):
        y = (y @ w.T) / math.sqrt(in_chs[i])
        if biases is not None:
            y = y + biases[i] * 0.1
        y = jnp.maximum(y, 0.0)
    return (y @ beta) / beta.shape[0]


# ----------------------------------- main ----------------------------------- #
if __name__ == "__main__":
    key = jax.random.PRNGKey(0)
    k_param, k_param_b, k_x, k_x2 = jax.random.split(key, 4)

    # Small config consistent with the module: d = 2**num_layers spatial sites.
    input_channels, h, out_dim, num_layers = 4, 32, 3, 3
    d = 2 ** num_layers  # 8

    # ---- 1) f32 MXU operands, no bias, small batch (tight tolerance) ----
    weights, biases, beta, in_chs = init_fcn2_params(
        k_param, input_channels, h, out_dim, num_layers, bias=False
    )
    x = jax.random.normal(k_x, (2, input_channels, d), jnp.float32)
    w_t, b_prep, beta_t_pad, odim = prepare_params(
        weights, biases, beta, in_chs, compute_dtype=jnp.float32
    )
    out = jax.block_until_ready(fcn2_forward(x, w_t, b_prep, beta_t_pad, out_dim=odim))
    ref = fcn2_ref(x, weights, biases, beta, in_chs)
    np.testing.assert_allclose(np.asarray(out), np.asarray(ref), rtol=1e-4, atol=1e-4)

    # ---- 2) f32, WITH bias, B=300: single-tile default + forced multi-tile path ----
    weights_b, biases_b, beta_b, in_chs_b = init_fcn2_params(
        k_param_b, input_channels, h, out_dim, num_layers, bias=True
    )
    x_big = jax.random.normal(k_x2, (300, input_channels, d), jnp.float32)
    w_t_b, b_prep_b, beta_t_b, odim_b = prepare_params(
        weights_b, biases_b, beta_b, in_chs_b, compute_dtype=jnp.float32
    )
    out_big = jax.block_until_ready(
        fcn2_forward(x_big, w_t_b, b_prep_b, beta_t_b, out_dim=odim_b)
    )
    ref_big = fcn2_ref(x_big, weights_b, biases_b, beta_b, in_chs_b)
    np.testing.assert_allclose(
        np.asarray(out_big), np.asarray(ref_big), rtol=1e-4, atol=1e-4
    )
    # Force several batch tiles so the multi-tile grid + partial final tile is exercised.
    out_tiled = jax.block_until_ready(
        fcn2_forward(x_big, w_t_b, b_prep_b, beta_t_b, out_dim=odim_b, block_b=128)
    )
    np.testing.assert_allclose(
        np.asarray(out_tiled), np.asarray(ref_big), rtol=1e-4, atol=1e-4
    )

    # ---- 3) default bf16 MXU operands (f32 accumulate / bias / ReLU), loose tolerance ----
    w_t16, b_prep16, beta_t16, odim16 = prepare_params(weights, biases, beta, in_chs)
    out16 = jax.block_until_ready(
        fcn2_forward(x, w_t16, b_prep16, beta_t16, out_dim=odim16)
    )
    np.testing.assert_allclose(np.asarray(out16), np.asarray(ref), rtol=0.1, atol=0.1)

    print("KERNEL_OK")
</pallas_src>

<mosaic_0001>
module attributes {stable_mosaic.version = 11 : i64} {
  func.func @kernel(%arg0: i32, %arg1: memref<2x32xf32, #tpu.memory_space<vmem>>, %arg2: memref<32x128xf32, #tpu.memory_space<vmem>>, %arg3: memref<128x128xf32, #tpu.memory_space<vmem>>, %arg4: memref<128x128xf32, #tpu.memory_space<vmem>>, %arg5: memref<8x128xf32, #tpu.memory_space<vmem>>, %arg6: memref<8x2xf32, #tpu.memory_space<vmem>>) attributes {dimension_semantics = [#tpu.dimension_semantics<parallel>], iteration_bounds = array<i64: 1>, scalar_prefetch = 0 : i64, scratch_operands = 0 : i64, tpu.core_type = #tpu.core_type<tc>, window_params = [{transform_indices = @transform_0, window_bounds = array<i64: 2, 32>}, {pipeline_mode = #tpu.pipeline_mode<synchronous>, transform_indices = @transform_1, window_bounds = array<i64: 32, 128>}, {pipeline_mode = #tpu.pipeline_mode<synchronous>, transform_indices = @transform_2, window_bounds = array<i64: 128, 128>}, {pipeline_mode = #tpu.pipeline_mode<synchronous>, transform_indices = @transform_3, window_bounds = array<i64: 128, 128>}, {pipeline_mode = #tpu.pipeline_mode<synchronous>, transform_indices = @transform_4, window_bounds = array<i64: 8, 128>}, {transform_indices = @transform_5, window_bounds = array<i64: 8, 2>}]} {
    %c0 = arith.constant 0 : index
    %c0_0 = arith.constant 0 : index
    %0 = vector.load %arg1[%c0, %c0_0] : memref<2x32xf32, #tpu.memory_space<vmem>>, vector<2x32xf32>
    %c0_1 = arith.constant 0 : index
    %c0_2 = arith.constant 0 : index
    %1 = vector.load %arg2[%c0_1, %c0_2] : memref<32x128xf32, #tpu.memory_space<vmem>>, vector<32x128xf32>
    %cst = arith.constant dense<0.000000e+00> : vector<2x128xf32>
    %2 = tpu.matmul %0, %1, %cst {dimension_numbers = #tpu.dot_dimension_numbers<[1], [0], [0], [1], [0, 0, 1, 1], [], []>} : vector<2x32xf32>, vector<32x128xf32>, vector<2x128xf32> -> vector<2x128xf32>
    %cst_3 = arith.constant 0.000000e+00 : f32
    %3 = vector.broadcast %cst_3 : f32 to vector<2x128xf32>
    %4 = arith.maximumf %2, %3 : vector<2x128xf32>
    %c0_4 = arith.constant 0 : index
    %c0_5 = arith.constant 0 : index
    %5 = vector.load %arg3[%c0_4, %c0_5] : memref<128x128xf32, #tpu.memory_space<vmem>>, vector<128x128xf32>
    %cst_6 = arith.constant dense<0.000000e+00> : vector<2x128xf32>
    %6 = tpu.matmul %4, %5, %cst_6 {dimension_numbers = #tpu.dot_dimension_numbers<[1], [0], [0], [1], [0, 0, 1, 1], [], []>} : vector<2x128xf32>, vector<128x128xf32>, vector<2x128xf32> -> vector<2x128xf32>
    %cst_7 = arith.constant 0.000000e+00 : f32
    %7 = vector.broadcast %cst_7 : f32 to vector<2x128xf32>
    %8 = arith.maximumf %6, %7 : vector<2x128xf32>
    %c0_8 = arith.constant 0 : index
    %c0_9 = arith.constant 0 : index
    %9 = vector.load %arg4[%c0_8, %c0_9] : memref<128x128xf32, #tpu.memory_space<vmem>>, vector<128x128xf32>
    %cst_10 = arith.constant dense<0.000000e+00> : vector<2x128xf32>
    %10 = tpu.matmul %8, %9, %cst_10 {dimension_numbers = #tpu.dot_dimension_numbers<[1], [0], [0], [1], [0, 0, 1, 1], [], []>} : vector<2x128xf32>, vector<128x128xf32>, vector<2x128xf32> -> vector<2x128xf32>
    %cst_11 = arith.constant 0.000000e+00 : f32
    %11 = vector.broadcast %cst_11 : f32 to vector<2x128xf32>
    %12 = arith.maximumf %10, %11 : vector<2x128xf32>
    %c0_12 = arith.constant 0 : index
    %c0_13 = arith.constant 0 : index
    %13 = vector.load %arg5[%c0_12, %c0_13] : memref<8x128xf32, #tpu.memory_space<vmem>>, vector<8x128xf32>
    %cst_14 = arith.constant dense<0.000000e+00> : vector<8x2xf32>
    %14 = tpu.matmul %13, %12, %cst_14 {dimension_numbers = #tpu.dot_dimension_numbers<[1], [1], [0], [0], [0, 0, 1, 0], [], []>} : vector<8x128xf32>, vector<2x128xf32>, vector<8x2xf32> -> vector<8x2xf32>
    %c0_15 = arith.constant 0 : index
    %c0_16 = arith.constant 0 : index
    %15 = vector.load %arg6[%c0_15, %c0_16] : memref<8x2xf32, #tpu.memory_space<vmem>>, vector<8x2xf32>
    tpu.vector_store %arg6[%c0_15, %c0_16], %14 {strides = array<i32>} : memref<8x2xf32, #tpu.memory_space<vmem>>, vector<8x2xf32>,
    return
  }
  func.func @transform_0(%arg0: i32) -> (i32, i32) {
    %c0_i32 = arith.constant 0 : i32
    %c0_i32_0 = arith.constant 0 : i32
    return %arg0, %c0_i32 : i32, i32
  }
  func.func @transform_1(%arg0: i32) -> (i32, i32) {
    %c0_i32 = arith.constant 0 : i32
    %c0_i32_0 = arith.constant 0 : i32
    %c0_i32_1 = arith.constant 0 : i32
    return %c0_i32, %c0_i32_0 : i32, i32
  }
  func.func @transform_2(%arg0: i32) -> (i32, i32) {
    %c0_i32 = arith.constant 0 : i32
    %c0_i32_0 = arith.constant 0 : i32
    %c0_i32_1 = arith.constant 0 : i32
    return %c0_i32, %c0_i32_0 : i32, i32
  }
  func.func @transform_3(%arg0: i32) -> (i32, i32) {
    %c0_i32 = arith.constant 0 : i32
    %c0_i32_0 = arith.constant 0 : i32
    %c0_i32_1 = arith.constant 0 : i32
    return %c0_i32, %c0_i32_0 : i32, i32
  }
  func.func @transform_4(%arg0: i32) -> (i32, i32) {
    %c0_i32 = arith.constant 0 : i32
    %c0_i32_0 = arith.constant 0 : i32
    %c0_i32_1 = arith.constant 0 : i32
    return %c0_i32, %c0_i32_0 : i32, i32
  }
  func.func @transform_5(%arg0: i32) -> (i32, i32) {
    %c0_i32 = arith.constant 0 : i32
    %c0_i32_0 = arith.constant 0 : i32
    return %c0_i32, %arg0 : i32, i32
  }
}

</mosaic_0001>

<bundles_post_ra>
// kernel: fcn2_forward.1
= control target key start
LH: loop header
LB: loop body
LE: loop exit
PB: predicated region body
PF: predicated region fallthrough
CT: control target
= control target key end

     0   :  { %10 = vsyncpa [#allocation3], 0  ;;  %s780_s0 = inlined_call_operand.vmem [shape: f32[2,32], index: 0, kind: input, shape index: {}]   ;;  %s781_s1 = inlined_call_operand.hbm [shape: f32[32,128], index: 1, kind: input, shape index: {}]   ;;  %s782_s2 = inlined_call_operand.hbm [shape: f32[128,128], index: 2, kind: input, shape index: {}]   ;;  %s783_s3 = inlined_call_operand.hbm [shape: f32[128,128], index: 3, kind: input, shape index: {}]   ;;  %s784_s4 = inlined_call_operand.vmem [shape: f32[8,128], index: 4, kind: input, shape index: {}]   ;;  %s785_s5 = inlined_call_operand.vmem [shape: f32[8,2], index: 5, kind: output, shape index: {}]  }
   0x1   :  { %11 = vsyncpa [#allocation5], 0  ;;  %s654_s18 = smov [#allocation4]   ;;  %s655_s20 = smov [#allocation2]  }
   0x2   :  { %s31_s19 = sshll.u32 %s654_s18, 4  ;;  %s19_s21 = sshll.u32 %s655_s20, 4  ;;  %s32_s19 = int_to_ptr.vmem [resolvable:$true] %s31_s19  ;;  %s692_s21 = int_to_ptr.vmem [resolvable:$true] %s19_s21 }
   0x3   :  { %s584_s24 = scalar_lea.hbm %s782_s2, 2048 }
   0x4   :  { %p585_p0 = scmp.ne.s32.totalorder %s782_s2, %s584_s24  ;;  %p588_p1 = scmp.lt.u32.totalorder %s584_s24, %s782_s2 }
   0x6   :  { %p590_p2 = pnand %p588_p1, %p585_p0 }
   0x8   :  { %593 = shalt.err (!%p590_p2)
}
   0x9   :  { %s594_s29 = scalar_lea.vmem %s32_s19, 2048  ;;  %p599_p4 = scmp.lt.s32.totalorder %s32_s19, %s32_s19 }
   0xa   :  { %p595_p3 = scmp.ne.s32.totalorder %s32_s19, %s594_s29  ;;  %p600_p5 = scmp.lt.s32.totalorder %s594_s29, %s594_s29 }
   0xc   :  { %p601_p6 = por %p600_p5, %p599_p4 }
   0xe   :  { %p602_p7 = pnand %p601_p6, %p595_p3 }
  0x10   :  { %605 = shalt.err (!%p602_p7)
}
  0x11   :  { %s656_s30 = smov 128   ;;  %s657_s6 = smov 8  }
  0x12   :  { %37 = dma.hbm_to_vmem [thread:$0]  %s782_s2, 2048, %s32_s19, [#allocation5], %s656_s30, %s656_s30, %s657_s6  }
  0x13   :  { %s606_s11 = scalar_lea.hbm %s781_s1, 512 }
  0x14   :  { %p607_p8 = scmp.ne.s32.totalorder %s781_s1, %s606_s11  ;;  %p610_p9 = scmp.lt.u32.totalorder %s606_s11, %s781_s1 }
  0x16   :  { %p612_p10 = pnand %p610_p9, %p607_p8 }
  0x18   :  { %615 = shalt.err (!%p612_p10)
}
  0x19   :  { %s616_s16 = scalar_lea.vmem %s692_s21, 512  ;;  %p621_p12 = scmp.lt.s32.totalorder %s692_s21, %s692_s21 }
  0x1a   :  { %p617_p11 = scmp.ne.s32.totalorder %s692_s21, %s616_s16  ;;  %p622_p13 = scmp.lt.s32.totalorder %s616_s16, %s616_s16 }
  0x1c   :  { %p623_p0 = por %p622_p13, %p621_p12 }
  0x1e   :  { %p624_p1 = pnand %p623_p0, %p617_p11 }
  0x20   :  { %627 = shalt.err (!%p624_p1)
}
  0x21   :  { %25 = dma.hbm_to_vmem [thread:$0]  %s781_s1, 512, %s692_s21, [#allocation3], %s656_s30, %s656_s30, %s657_s6  }
  0x22   :  { %s658_s18 = smov [#allocation6]   ;;  %s628_s23 = scalar_lea.hbm %s783_s3, 2048 }
  0x23   :  { %s43_s19 = sshll.u32 %s658_s18, 4  ;;  %p629_p2 = scmp.ne.s32.totalorder %s783_s3, %s628_s23  ;;  %s44_s19 = int_to_ptr.vmem [resolvable:$true] %s43_s19 }
  0x24   :  { %p632_p3 = scmp.lt.u32.totalorder %s628_s23, %s783_s3 }
  0x26   :  { %p634_p4 = pnand %p632_p3, %p629_p2 }
  0x28   :  { %637 = shalt.err (!%p634_p4)
}
  0x29   :  { %s638_s28 = scalar_lea.vmem %s44_s19, 2048  ;;  %p643_p6 = scmp.lt.s32.totalorder %s44_s19, %s44_s19 }
  0x2a   :  { %p639_p5 = scmp.ne.s32.totalorder %s44_s19, %s638_s28  ;;  %p644_p7 = scmp.lt.s32.totalorder %s638_s28, %s638_s28 }
  0x2c   :  { %p645_p8 = por %p644_p7, %p643_p6 }
  0x2e   :  { %p646_p9 = pnand %p645_p8, %p639_p5 }
  0x30   :  { %649 = shalt.err (!%p646_p9)
}
  0x31   :  { %49 = dma.hbm_to_vmem [thread:$0]  %s783_s3, 2048, %s44_s19, [#allocation5], %s656_s30, %s656_s30, %s657_s6  }
  0x32   :  { %650 = dma.done.wait [#allocation3], 512  }
  0x33   :  { %651 = vsyncadd [#allocation3], 4294966784 }
  0x34   :  { %652 = dma.done.wait [#allocation5], 4096  }
  0x35   :  { %653 = vsyncadd [#allocation5], 4294963200  ;;  %v659_v0 = vmov 0.0|0.0   ;;  %vm660_vm0 = vmmov 0   ;;  %v661_v1 = vmov 0.0   ;;  %v62_v2 = vld [vmem:[#allocation2] sm:$0xff] }
  0x36   :  { %522 = vmatprep.subr.bf16.mxu0 %v659_v0  ;;  %444 = vmatprep.mubr.msk.f32.mxu0 %vm660_vm0, %v661_v1  ;;  %v63_v3 = vld [vmem:[#allocation2 + $0x8] sm:$0xff]  ;;  %v64_v4 = vld [vmem:[#allocation2 + $0x10] sm:$0xff]  ;;  %v65_v6 = vld [vmem:[#allocation2 + $0x18] sm:$0xff]  ;;  %vm66_vm1 = vcmask 261120   ;;  %vm386_vm2 = vcmask 15360  }
  0x37   :  { %528 = vmatprep.subr.bf16.mxu1 %v659_v0  ;;  %479 = vmatprep.mubr.msk.f32.mxu1 %vm660_vm0, %v661_v1  ;;  %v523_v5 = vpack.c.bf16 %v63_v3, %v62_v2  ;;  %v141_v7 = vld [vmem:[#allocation4] sm:$0xff]  ;;  %v142_v8 = vld [vmem:[#allocation4 + $0x8] sm:$0xff]  ;;  %v143_v9 = vld [vmem:[#allocation4 + $0x10] sm:$0xff]  ;;  %v526_v11 = vpack.c.bf16 %v65_v6, %v64_v4 }
  0x38   :  { %v144_v10 = vld [vmem:[#allocation4 + $0x18] sm:$0xff]  ;;  %v529_v12 = vpack.c.bf16 %v142_v8, %v141_v7  ;;  %v145_v14 = vld [vmem:[#allocation4 + $0x20] sm:$0xff]  ;;  %v146_v15 = vld [vmem:[#allocation4 + $0x28] sm:$0xff] }
  0x39   :  { %524 = vmatpush3.bf16.msra.mxu0 %v523_v5  ;;  %v532_v13 = vpack.c.bf16 %v144_v10, %v143_v9  ;;  %v61_v16 = vld [vmem:[%s780_s0] sm:$0x3]  ;;  %v535_v17 = vpack.c.bf16 %v146_v15, %v145_v14  ;;  %v147_v18 = vld [vmem:[#allocation4 + $0x30] sm:$0xff]  ;;  %v149_v21 = vld [vmem:[#allocation4 + $0x40] sm:$0xff] }
  0x3a   :  { %525 = vmatprep.subr.bf16.mxu0 %v659_v0  ;;  %530 = vmatpush3.bf16.msra.mxu1 %v529_v12  ;;  %v148_v19 = vld [vmem:[#allocation4 + $0x38] sm:$0xff]  ;;  %v150_v22 = vld [vmem:[#allocation4 + $0x48] sm:$0xff]  ;;  %v151_v24 = vld [vmem:[#allocation4 + $0x50] sm:$0xff] }
  0x3b   :  { %531 = vmatprep.subr.bf16.mxu1 %v659_v0  ;;  %v538_v20 = vpack.c.bf16 %v148_v19, %v147_v18  ;;  %v541_v23 = vpack.c.bf16 %v150_v22, %v149_v21  ;;  %v152_v25 = vld [vmem:[#allocation4 + $0x58] sm:$0xff]  ;;  %v153_v27 = vld [vmem:[#allocation4 + $0x60] sm:$0xff]  ;;  %v154_v28 = vld [vmem:[#allocation4 + $0x68] sm:$0xff] }
  0x3c   :  { %v544_v26 = vpack.c.bf16 %v152_v25, %v151_v24  ;;  %v547_v29 = vpack.c.bf16 %v154_v28, %v153_v27  ;;  %v155_v30 = vld [vmem:[#allocation4 + $0x70] sm:$0xff]  ;;  %v156_v31 = vld [vmem:[#allocation4 + $0x78] sm:$0xff]  ;;  %v228_v33 = vld [vmem:[#allocation6] sm:$0xff] }
  0x3d   :  { %527 = vmatpush3.bf16.msra.mxu0 %v526_v11  ;;  %v550_v32 = vpack.c.bf16 %v156_v31, %v155_v30  ;;  %v229_v34 = vld [vmem:[#allocation6 + $0x8] sm:$0xff]  ;;  %v230_v35 = vld [vmem:[#allocation6 + $0x10] sm:$0xff]  ;;  %v231_v37 = vld [vmem:[#allocation6 + $0x18] sm:$0xff] }
  0x3e   :  { %552 = vmatprep.subr.bf16.mxu0 %v659_v0  ;;  %533 = vmatpush3.bf16.msra.mxu1 %v532_v13  ;;  %v553_v36 = vpack.c.bf16 %v229_v34, %v228_v33  ;;  %v556_v38 = vpack.c.bf16 %v231_v37, %v230_v35  ;;  %v232_v39 = vld [vmem:[#allocation6 + $0x20] sm:$0xff]  ;;  %v233_v40 = vld [vmem:[#allocation6 + $0x28] sm:$0xff]  ;;  %v234_v42 = vld [vmem:[#allocation6 + $0x30] sm:$0xff] }
  0x3f   :  { %534 = vmatprep.subr.bf16.mxu1 %v659_v0  ;;  %v559_v41 = vpack.c.bf16 %v233_v40, %v232_v39  ;;  %v235_v43 = vld [vmem:[#allocation6 + $0x38] sm:$0xff]  ;;  %v236_v45 = vld [vmem:[#allocation6 + $0x40] sm:$0xff]  ;;  %v237_v46 = vld [vmem:[#allocation6 + $0x48] sm:$0xff] }
  0x40   :  { %445 = vmatmul.mubr.msk.f32.vlgmr.msra.gmra.mrb[0].mxu0 %vm66_vm1, %v61_v16  ;;  %v562_v44 = vpack.c.bf16 %v235_v43, %v234_v42  ;;  %v565_v47 = vpack.c.bf16 %v237_v46, %v236_v45  ;;  %v238_v48 = vld [vmem:[#allocation6 + $0x50] sm:$0xff]  ;;  %v239_v49 = vld [vmem:[#allocation6 + $0x58] sm:$0xff]  ;;  %v240_v51 = vld [vmem:[#allocation6 + $0x60] sm:$0xff] }
  0x41   :  { %514 = vmatprep.mubr.msk.f32.mxu0 %vm660_vm0, %v661_v1  ;;  %554 = vmatpush3.bf16.msra.mxu0 %v553_v36  ;;  %v568_v50 = vpack.c.bf16 %v239_v49, %v238_v48  ;;  %v241_v52 = vld [vmem:[#allocation6 + $0x68] sm:$0xff]  ;;  %v242_v57 = vld [vmem:[#allocation6 + $0x70] sm:$0xff]  ;;  %v243_v58 = vld [vmem:[#allocation6 + $0x78] sm:$0xff] }
  0x42   :  { %536 = vmatpush3.bf16.msra.mxu1 %v535_v17  ;;  %555 = vmatprep.subr.bf16.mxu0 %v659_v0  ;;  %v571_v53 = vpack.c.bf16 %v241_v52, %v240_v51  ;;  %v574_v59 = vpack.c.bf16 %v243_v58, %v242_v57 }
  0x43   :  { %537 = vmatprep.subr.bf16.mxu1 %v659_v0 }
  0x45   :  { %557 = vmatpush3.bf16.msra.mxu0 %v556_v38 }
  0x46   :  { %539 = vmatpush3.bf16.msra.mxu1 %v538_v20  ;;  %558 = vmatprep.subr.bf16.mxu0 %v659_v0 }
  0x47   :  { %540 = vmatprep.subr.bf16.mxu1 %v659_v0 }
  0x49   :  { %560 = vmatpush3.bf16.msra.mxu0 %v559_v41 }
  0x4a   :  { %542 = vmatpush3.bf16.msra.mxu1 %v541_v23  ;;  %561 = vmatprep.subr.bf16.mxu0 %v659_v0 }
  0x4b   :  { %543 = vmatprep.subr.bf16.mxu1 %v659_v0 }
  0x4d   :  { %563 = vmatpush3.bf16.msra.mxu0 %v562_v44 }
  0x4e   :  { %545 = vmatpush3.bf16.msra.mxu1 %v544_v26  ;;  %564 = vmatprep.subr.bf16.mxu0 %v659_v0 }
  0x4f   :  { %546 = vmatprep.subr.bf16.mxu1 %v659_v0 }
  0x51   :  { %566 = vmatpush3.bf16.msra.mxu0 %v565_v47 }
  0x52   :  { %548 = vmatpush3.bf16.msra.mxu1 %v547_v29  ;;  %567 = vmatprep.subr.bf16.mxu0 %v659_v0 }
  0x53   :  { %549 = vmatprep.subr.bf16.mxu1 %v659_v0 }
  0x55   :  { %569 = vmatpush3.bf16.msra.mxu0 %v568_v50 }
  0x56   :  { %551 = vmatpush3.bf16.msra.mxu1 %v550_v32  ;;  %570 = vmatprep.subr.bf16.mxu0 %v659_v0 }
  0x57   :  { %517 = vmatprep.subr.mxu1 %v661_v1 }
  0x59   :  { %572 = vmatpush3.bf16.msra.mxu0 %v571_v53 }
  0x5a   :  { %573 = vmatprep.subr.bf16.mxu0 %v659_v0  ;;  %v315_v0 = vld [vmem:[%s784_s4] sm:$0xff] }
  0x5d   :  { %575 = vmatpush3.bf16.msra.mxu0 %v574_v59 }
 0x113   :  { %v136_v54 = vpop.f32.mrb[0].mxu0 }
 0x114   :  { %v140_v55 = vmax.f32 %v136_v54, 0.0  ;;  %v446_v56 = vpop.f32.mrb[1].mxu0 }
 0x116   :  { %480 = vmatmul.mubr.f32.vlgmr.msra.gmra.mrb[0].mxu1 %v140_v55 }
 0x117   :  { %519 = vmatprep.mubr.msk.f32.mxu1 %vm660_vm0, %v661_v1 }
 0x1e9   :  { %v223_v60 = vpop.f32.mrb[0].mxu1 }
 0x1ea   :  { %v227_v61 = vmax.f32 %v223_v60, 0.0  ;;  %v481_v62 = vpop.f32.mrb[1].mxu1 }
 0x1ec   :  { %515 = vmatmul.mubr.f32.vlgmr.msra.gmra.mrb[2].mxu0 %v227_v61 }
 0x2bf   :  { %v310_v63 = vpop.f32.mrb[2].mxu0 }
 0x2c0   :  { %v314_v2 = vmax.f32 %v310_v63, 0.0  ;;  %v516_v3 = vpop.f32.mrb[3].mxu0 }
 0x2c2   :  { %518 = vmatpush3.xpose.msra.mxu1 %v314_v2 }
 0x2c5   :  { %520 = vmatmul.mubr.f32.vlgmr.msra.gmra.mrb[2].mxu1 %v315_v0 }
 0x398   :  { %v382_v4 = vpop.f32.mrb[2].mxu1 }
 0x399   :  { %387 = vst.msk [vmem:[%s785_s5] sm:$0xff] %vm386_vm2, %v382_v4  ;;  %v521_v1 = vpop.f32.mrb[3].mxu1 }
 0x39a   :  { %392 = vsyncpa [#allocation3], 1 }
 0x39b   :  { %393 = vsyncpa [#allocation5], 1 }

</bundles_post_ra>
